<compile_context>
chip_gen: v7x
topology: tpu7x:2x2x1
jax: 0.10.0
libtpu: 0.0.40
codegen_flags: <defaults>
</compile_context>

<pallas_src>
import jax
import jax.numpy as jnp
from jax.experimental import pallas as pl
from jax.experimental.pallas import tpu as pltpu


_LANES = 128                 # VMEM lane width; F pads to this in VMEM
_DEFAULT_TILE_CAP = 8192     # rows per grid step (multiple of 128)
_SMALL_BATCH_FALLBACK = 256  # below this, a fused XLA op beats a pallas_call


# ---------------------------------------------------------------------------
# Kernels
# ---------------------------------------------------------------------------

def _ranknet_pair_kernel(x1_ref, x2_ref, w_ref, o_ref):
    """sigmoid((x1 - x2) @ w_eff) for one (T, F) batch tile.

    x1_ref, x2_ref : (T, F)  feature tiles (batch rows on sublanes)
    w_ref          : (1, F)  folded weights W1 @ W2 @ W3 stored as a row
    o_ref          : (1, T)  lane-dense scores row for this tile
    """
    d = x1_ref[...] - x2_ref[...]                        # (T, F)  VPU
    # (1, F) contracted with (T, F) over F  ->  (1, T) lane-dense row (MXU).
    s = jax.lax.dot_general(
        w_ref[...], d,
        dimension_numbers=(((1,), (1,)), ((), ())),
        preferred_element_type=jnp.float32)
    o_ref[...] = jax.nn.sigmoid(s).astype(o_ref.dtype)   # EUP


def _ranknet_score_kernel(x_ref, w_ref, b_ref, o_ref):
    """RankNet.predict: x @ w_eff + b_eff for one (T, F) batch tile."""
    s = jax.lax.dot_general(
        w_ref[...], x_ref[...],
        dimension_numbers=(((1,), (1,)), ((), ())),
        preferred_element_type=jnp.float32)               # (1, T)
    o_ref[...] = (s + b_ref[0, 0]).astype(o_ref.dtype)    # scalar bias from SMEM


# ---------------------------------------------------------------------------
# Helpers
# ---------------------------------------------------------------------------

def _round_up(x, m):
    return ((x + m - 1) // m) * m


def _fold_weights(params, dtype):
    """Fold the affine 3-layer MLP into a single (1, F) row + scalar bias.

    The fold itself is done in f32; only the final w_eff is cast."""
    w1, b1, w2, b2, w3, b3 = params
    F = w1.shape[0]
    w_eff = (w1 @ w2 @ w3).reshape(1, F)                               # f32
    b_eff = (b1 @ w2 @ w3 + b2 @ w3 + b3).reshape(1, 1).astype(jnp.float32)
    return w_eff.astype(dtype), b_eff


def _choose_tile(B, cap):
    """Adaptive batch tile: as large as possible, but keep >=2 grid steps
    for non-trivial batches (v7x has 2 TensorCores)."""
    Bp = _round_up(B, _LANES)
    if Bp >= 2 * cap:
        return cap
    if Bp >= 1024:
        return min(cap, _round_up(pl.cdiv(Bp, 2), _LANES))
    return Bp


def _pad_batch(x, tile):
    B = x.shape[0]
    B_pad = pl.cdiv(B, tile) * tile
    if B_pad != B:
        x = jnp.pad(x, ((0, B_pad - B), (0, 0)))
    return x, B_pad


def _vmem_limit_bytes(tile, n_tiled_inputs, itemsize):
    """Explicit VMEM budget: F<128 pads to 128 lanes per input tile, each
    input is double-buffered by the pipeline, plus output row + headroom."""
    in_bytes = n_tiled_inputs * 2 * tile * _LANES * itemsize
    out_bytes = 2 * tile * 4
    headroom = 8 << 20
    total = in_bytes + out_bytes + headroom
    return int(min(max(total, 16 << 20), 64 << 20))   # stay inside v7x physical


# ---------------------------------------------------------------------------
# Wrappers
# ---------------------------------------------------------------------------

def ranknet_forward(x1, x2, params, *, batch_tile_cap=_DEFAULT_TILE_CAP,
                    input_dtype=None, force_pallas=False):
    """x1, x2: (B, F) float. Returns (B, 1) f32 = sigmoid(model(x1)-model(x2))."""
    B, F = x1.shape
    assert x2.shape == (B, F)
    dt = jnp.dtype(input_dtype) if input_dtype is not None else x1.dtype
    w_eff, _ = _fold_weights(params, dt)   # biases cancel in s1 - s2

    if B < _SMALL_BATCH_FALLBACK and not force_pallas:
        # Tiny batch: fused XLA expression avoids launch + 128-row padding.
        d = (x1 - x2).astype(jnp.float32)
        return jax.nn.sigmoid(d @ w_eff.astype(jnp.float32).T)

    tile = _choose_tile(B, batch_tile_cap)
    assert tile % _LANES == 0
    x1p, B_pad = _pad_batch(x1.astype(dt), tile)
    x2p, _ = _pad_batch(x2.astype(dt), tile)
    grid = (B_pad // tile,)
    itemsize = jnp.dtype(dt).itemsize

    out = pl.pallas_call(
        _ranknet_pair_kernel,
        out_shape=jax.ShapeDtypeStruct((1, B_pad), jnp.float32),
        grid=grid,
        in_specs=[
            pl.BlockSpec((tile, F), lambda i: (i, 0)),   # x1 tile
            pl.BlockSpec((tile, F), lambda i: (i, 0)),   # x2 tile
            pl.BlockSpec((1, F), lambda i: (0, 0)),      # folded weights (resident)
        ],
        out_specs=pl.BlockSpec((1, tile), lambda i: (0, i)),  # lane-dense row
        compiler_params=pltpu.CompilerParams(
            dimension_semantics=("parallel",),
            vmem_limit_bytes=_vmem_limit_bytes(tile, 2, itemsize)),
        cost_estimate=pl.CostEstimate(
            flops=2 * B_pad * F + B_pad,
            transcendentals=B_pad,
            bytes_accessed=2 * B_pad * F * itemsize + B_pad * 4 + F * itemsize),
    )(x1p, x2p, w_eff)
    return out[0, :B].reshape(B, 1)


def ranknet_predict(x, params, *, batch_tile_cap=_DEFAULT_TILE_CAP,
                    input_dtype=None, force_pallas=False):
    """RankNet.predict: raw score model(x), shape (B, 1) f32."""
    B, F = x.shape
    dt = jnp.dtype(input_dtype) if input_dtype is not None else x.dtype
    w_eff, b_eff = _fold_weights(params, dt)

    if B < _SMALL_BATCH_FALLBACK and not force_pallas:
        return x.astype(jnp.float32) @ w_eff.astype(jnp.float32).T + b_eff

    tile = _choose_tile(B, batch_tile_cap)
    assert tile % _LANES == 0
    xp, B_pad = _pad_batch(x.astype(dt), tile)
    grid = (B_pad // tile,)
    itemsize = jnp.dtype(dt).itemsize

    out = pl.pallas_call(
        _ranknet_score_kernel,
        out_shape=jax.ShapeDtypeStruct((1, B_pad), jnp.float32),
        grid=grid,
        in_specs=[
            pl.BlockSpec((tile, F), lambda i: (i, 0)),                 # x tile
            pl.BlockSpec((1, F), lambda i: (0, 0)),                    # folded weights
            pl.BlockSpec(memory_space=pltpu.MemorySpace.SMEM),         # scalar bias
        ],
        out_specs=pl.BlockSpec((1, tile), lambda i: (0, i)),
        compiler_params=pltpu.CompilerParams(
            dimension_semantics=("parallel",),
            vmem_limit_bytes=_vmem_limit_bytes(tile, 1, itemsize)),
        cost_estimate=pl.CostEstimate(
            flops=2 * B_pad * F,
            transcendentals=0,
            bytes_accessed=B_pad * F * itemsize + B_pad * 4 + F * itemsize),
    )(xp, w_eff, b_eff)
    return out[0, :B].reshape(B, 1)


# ---------------------------------------------------------------------------
# Init + pure-JAX reference (matches torch layer ordering, no fold)
# ---------------------------------------------------------------------------

def init_params(key, num_feature):
    """Deterministic init mimicking nn.Linear default (uniform +-1/sqrt(fan_in)).
    Weights stored as (in, out) = transpose of torch's (out, in); biases (1, out)."""
    dims = [(num_feature, 32), (32, 16), (16, 1)]
    params = []
    for (fan_in, fan_out) in dims:
        key, kw, kb = jax.random.split(key, 3)
        bound = 1.0 / jnp.sqrt(fan_in)
        w = jax.random.uniform(kw, (fan_in, fan_out), jnp.float32, -bound, bound)
        b = jax.random.uniform(kb, (1, fan_out), jnp.float32, -bound, bound)
        params += [w, b]
    return tuple(params)


def _score_ref(x, params):
    w1, b1, w2, b2, w3, b3 = params
    h1 = x @ w1 + b1
    h2 = h1 @ w2 + b2
    return h2 @ w3 + b3


def ranknet_ref(x1, x2, params):
    return jax.nn.sigmoid(_score_ref(x1, params) - _score_ref(x2, params))


if __name__ == "__main__":
    key = jax.random.PRNGKey(0)
    num_feature = 22   # PatchScout feature count; any F works

    kp, k1, k2, k3, k4 = jax.random.split(key, 5)
    params = init_params(kp, num_feature)

    # --- small batch: exercises the Pallas kernel (forced) and the XLA fallback
    B_small = 37       # deliberately not a tile multiple: exercises pad + slice
    x1s = jax.random.normal(k1, (B_small, num_feature), jnp.float32)
    x2s = jax.random.normal(k2, (B_small, num_feature), jnp.float32)

    out_k = jax.block_until_ready(ranknet_forward(x1s, x2s, params, force_pallas=True))
    out_f = jax.block_until_ready(ranknet_forward(x1s, x2s, params))   # fallback path
    ref_s = ranknet_ref(x1s, x2s, params)
    assert out_k.shape == (B_small, 1)
    assert jnp.allclose(out_k, ref_s, atol=1e-5, rtol=1e-5), "forward (pallas) mismatch"
    assert jnp.allclose(out_f, ref_s, atol=1e-5, rtol=1e-5), "forward (fallback) mismatch"

    pk = jax.block_until_ready(ranknet_predict(x1s, params, force_pallas=True))
    pf = jax.block_until_ready(ranknet_predict(x1s, params))
    p_ref = _score_ref(x1s, params)
    assert pk.shape == (B_small, 1)
    assert jnp.allclose(pk, p_ref, atol=1e-5, rtol=1e-5), "predict (pallas) mismatch"
    assert jnp.allclose(pf, p_ref, atol=1e-5, rtol=1e-5), "predict (fallback) mismatch"

    # --- larger batch: exercises the adaptive multi-tile grid (>= 2 steps)
    B_big = 1000
    x1b = jax.random.normal(k3, (B_big, num_feature), jnp.float32)
    x2b = jax.random.normal(k4, (B_big, num_feature), jnp.float32)

    out_b = jax.block_until_ready(ranknet_forward(x1b, x2b, params))
    ref_b = ranknet_ref(x1b, x2b, params)
    assert out_b.shape == (B_big, 1)
    assert jnp.allclose(out_b, ref_b, atol=1e-5, rtol=1e-5), "forward (big) mismatch"

    pred_b = jax.block_until_ready(ranknet_predict(x1b, params))
    pref_b = _score_ref(x1b, params)
    assert jnp.allclose(pred_b, pref_b, atol=1e-5, rtol=1e-5), "predict (big) mismatch"

    print("KERNEL_OK")
</pallas_src>

<mosaic_0001>
module attributes {stable_mosaic.version = 11 : i64} {
  func.func @_ranknet_pair_kernel(%arg0: i32, %arg1: memref<128x22xf32, #tpu.memory_space<vmem>>, %arg2: memref<128x22xf32, #tpu.memory_space<vmem>>, %arg3: memref<1x22xf32, #tpu.memory_space<vmem>>, %arg4: memref<1x128xf32, #tpu.memory_space<vmem>>) attributes {dimension_semantics = [#tpu.dimension_semantics<parallel>], iteration_bounds = array<i64: 1>, scalar_prefetch = 0 : i64, scratch_operands = 0 : i64, tpu.core_type = #tpu.core_type<tc>, window_params = [{transform_indices = @transform_0, window_bounds = array<i64: 128, 22>}, {transform_indices = @transform_1, window_bounds = array<i64: 128, 22>}, {pipeline_mode = #tpu.pipeline_mode<synchronous>, transform_indices = @transform_2, window_bounds = array<i64: 1, 22>}, {transform_indices = @transform_3, window_bounds = array<i64: 1, 128>}]} {
    %c0 = arith.constant 0 : index
    %c0_0 = arith.constant 0 : index
    %0 = vector.load %arg1[%c0, %c0_0] : memref<128x22xf32, #tpu.memory_space<vmem>>, vector<128x22xf32>
    %c0_1 = arith.constant 0 : index
    %c0_2 = arith.constant 0 : index
    %1 = vector.load %arg2[%c0_1, %c0_2] : memref<128x22xf32, #tpu.memory_space<vmem>>, vector<128x22xf32>
    %2 = arith.subf %0, %1 : vector<128x22xf32>
    %c0_3 = arith.constant 0 : index
    %c0_4 = arith.constant 0 : index
    %3 = vector.load %arg3[%c0_3, %c0_4] : memref<1x22xf32, #tpu.memory_space<vmem>>, vector<1x22xf32>
    %cst = arith.constant dense<0.000000e+00> : vector<1x128xf32>
    %4 = tpu.matmul %3, %2, %cst {dimension_numbers = #tpu.dot_dimension_numbers<[1], [1], [0], [0], [0, 0, 1, 0], [], []>} : vector<1x22xf32>, vector<128x22xf32>, vector<1x128xf32> -> vector<1x128xf32>
    %5 = arith.negf %4 : vector<1x128xf32>
    %6 = math.exp %5 : vector<1x128xf32>
    %cst_5 = arith.constant 1.000000e+00 : f32
    %7 = vector.broadcast %cst_5 : f32 to vector<1x128xf32>
    %8 = arith.addf %7, %6 : vector<1x128xf32>
    %9 = arith.divf %7, %8 : vector<1x128xf32>
    %c0_6 = arith.constant 0 : index
    %c0_7 = arith.constant 0 : index
    %10 = vector.load %arg4[%c0_6, %c0_7] : memref<1x128xf32, #tpu.memory_space<vmem>>, vector<1x128xf32>
    tpu.vector_store %arg4[%c0_6, %c0_7], %9 {strides = array<i32>} : memref<1x128xf32, #tpu.memory_space<vmem>>, vector<1x128xf32>,
    return
  }
  func.func @transform_0(%arg0: i32) -> (i32, i32) {
    %c0_i32 = arith.constant 0 : i32
    %c0_i32_0 = arith.constant 0 : i32
    return %arg0, %c0_i32 : i32, i32
  }
  func.func @transform_1(%arg0: i32) -> (i32, i32) {
    %c0_i32 = arith.constant 0 : i32
    %c0_i32_0 = arith.constant 0 : i32
    return %arg0, %c0_i32 : i32, i32
  }
  func.func @transform_2(%arg0: i32) -> (i32, i32) {
    %c0_i32 = arith.constant 0 : i32
    %c0_i32_0 = arith.constant 0 : i32
    %c0_i32_1 = arith.constant 0 : i32
    return %c0_i32, %c0_i32_0 : i32, i32
  }
  func.func @transform_3(%arg0: i32) -> (i32, i32) {
    %c0_i32 = arith.constant 0 : i32
    %c0_i32_0 = arith.constant 0 : i32
    return %c0_i32, %arg0 : i32, i32
  }
}

</mosaic_0001>

<bundles_post_ra>
// kernel: tpu_custom_call.1
= control target key start
LH: loop header
LB: loop body
LE: loop exit
PB: predicated region body
PF: predicated region fallthrough
CT: control target
= control target key end

     0   :  { %vm64_vm0 = vcmask 179200   ;;  %v341_v3 = vmov 0.0|0.0   ;;  %vm342_vm2 = vmmov 0   ;;  %v343_v9 = vmov 0.0   ;;  %s507_s0 = inlined_call_operand.vmem [shape: f32[128,22], index: 0, kind: input, shape index: {}]   ;;  %s508_s1 = inlined_call_operand.vmem [shape: f32[128,22], index: 1, kind: input, shape index: {}]   ;;  %s509_s2 = inlined_call_operand.vmem [shape: f32[1,22], index: 2, kind: input, shape index: {}]   ;;  %s510_s3 = inlined_call_operand.hbm [shape: f32[1,128], index: 3, kind: output, shape index: {}]  }
   0x1   :  { %v15_v0 = vld [vmem:[%s507_s0] sm:$0xff]  ;;  %v16_v1 = vld [vmem:[%s507_s0 + $0x8] sm:$0xff]  ;;  %277 = vmatprep.subr.bf16.mxu0 %v341_v3  ;;  %vm380_vm1 = vmpackc.low %vm64_vm0, %vm64_vm0  ;;  %274 = vmatprep.mubr.msk.f32.mxu0 %vm342_vm2, %v343_v9 }
   0x2   :  { %v31_v2 = vld [vmem:[%s508_s1] sm:$0xff]  ;;  %v32_v4 = vld [vmem:[%s508_s1 + $0x8] sm:$0xff]  ;;  %v17_v8 = vld [vmem:[%s507_s0 + $0x10] sm:$0xff] }
   0x3   :  { %v47_v5 = vsub.f32 %v15_v0, %v31_v2  ;;  %v48_v6 = vsub.f32 %v16_v1, %v32_v4  ;;  %v18_v10 = vld [vmem:[%s507_s0 + $0x18] sm:$0xff]  ;;  %v33_v11 = vld [vmem:[%s508_s1 + $0x10] sm:$0xff]  ;;  %v19_v17 = vld [vmem:[%s507_s0 + $0x20] sm:$0xff] }
   0x4   :  { %v34_v12 = vld [vmem:[%s508_s1 + $0x18] sm:$0xff]  ;;  %v49_v14 = vsub.f32 %v17_v8, %v33_v11  ;;  %v20_v18 = vld [vmem:[%s507_s0 + $0x28] sm:$0xff]  ;;  %v35_v19 = vld [vmem:[%s508_s1 + $0x20] sm:$0xff] }
   0x5   :  { %v278_v13 = vpack.c.bf16 %v48_v6, %v47_v5  ;;  %v50_v15 = vsub.f32 %v18_v10, %v34_v12  ;;  %v36_v20 = vld [vmem:[%s508_s1 + $0x28] sm:$0xff] }
   0x7   :  { %280 = vmatpush3.bf16.xpose.msk.msra.mxu0 %vm380_vm1, %v278_v13  ;;  %v282_v16 = vpack.c.bf16 %v50_v15, %v49_v14 }
   0x8   :  { %281 = vmatprep.subr.bf16.mxu0 %v341_v3 }
   0x9   :  { %8 = vsyncpa [#allocation3], 0  ;;  %v51_v21 = vsub.f32 %v19_v17, %v35_v19  ;;  %v52_v22 = vsub.f32 %v20_v18, %v36_v20  ;;  %v21_v24 = vld [vmem:[%s507_s0 + $0x30] sm:$0xff]  ;;  %v22_v25 = vld [vmem:[%s507_s0 + $0x38] sm:$0xff] }
   0xa   :  { %v37_v26 = vld [vmem:[%s508_s1 + $0x30] sm:$0xff]  ;;  %v38_v27 = vld [vmem:[%s508_s1 + $0x38] sm:$0xff]  ;;  %v23_v31 = vld [vmem:[%s507_s0 + $0x40] sm:$0xff] }
   0xb   :  { %v286_v23 = vpack.c.bf16 %v52_v22, %v51_v21  ;;  %v53_v28 = vsub.f32 %v21_v24, %v37_v26  ;;  %v54_v29 = vsub.f32 %v22_v25, %v38_v27  ;;  %v24_v32 = vld [vmem:[%s507_s0 + $0x48] sm:$0xff]  ;;  %v39_v33 = vld [vmem:[%s508_s1 + $0x40] sm:$0xff]  ;;  %v25_v38 = vld [vmem:[%s507_s0 + $0x50] sm:$0xff] }
   0xc   :  { %v40_v34 = vld [vmem:[%s508_s1 + $0x48] sm:$0xff]  ;;  %v55_v35 = vsub.f32 %v23_v31, %v39_v33  ;;  %v26_v39 = vld [vmem:[%s507_s0 + $0x58] sm:$0xff]  ;;  %v41_v40 = vld [vmem:[%s508_s1 + $0x50] sm:$0xff] }
   0xd   :  { %v290_v30 = vpack.c.bf16 %v54_v29, %v53_v28  ;;  %v56_v36 = vsub.f32 %v24_v32, %v40_v34  ;;  %v42_v41 = vld [vmem:[%s508_s1 + $0x58] sm:$0xff]  ;;  %v57_v42 = vsub.f32 %v25_v38, %v41_v40  ;;  %v27_v45 = vld [vmem:[%s507_s0 + $0x60] sm:$0xff]  ;;  %v28_v46 = vld [vmem:[%s507_s0 + $0x68] sm:$0xff] }
   0xe   :  { %v58_v43 = vsub.f32 %v26_v39, %v42_v41  ;;  %v43_v47 = vld [vmem:[%s508_s1 + $0x60] sm:$0xff]  ;;  %v44_v48 = vld [vmem:[%s508_s1 + $0x68] sm:$0xff]  ;;  %v29_v52 = vld [vmem:[%s507_s0 + $0x70] sm:$0xff] }
   0xf   :  { %284 = vmatpush3.bf16.xpose.msk.msra.mxu0 %vm380_vm1, %v282_v16  ;;  %v294_v37 = vpack.c.bf16 %v56_v36, %v55_v35  ;;  %v59_v49 = vsub.f32 %v27_v45, %v43_v47  ;;  %v60_v50 = vsub.f32 %v28_v46, %v44_v48  ;;  %v30_v53 = vld [vmem:[%s507_s0 + $0x78] sm:$0xff]  ;;  %v45_v54 = vld [vmem:[%s508_s1 + $0x70] sm:$0xff]  ;;  %v63_v59 = vld [vmem:[%s509_s2] sm:$0x1] }
  0x10   :  { %285 = vmatprep.subr.bf16.mxu0 %v341_v3  ;;  %v298_v44 = vpack.c.bf16 %v58_v43, %v57_v42  ;;  %v46_v55 = vld [vmem:[%s508_s1 + $0x78] sm:$0xff]  ;;  %v61_v56 = vsub.f32 %v29_v52, %v45_v54  ;;  %s344_s1 = smov [#allocation2]  }
  0x11   :  { %v302_v51 = vpack.c.bf16 %v60_v50, %v59_v49  ;;  %v62_v57 = vsub.f32 %v30_v53, %v46_v55  ;;  %s199_s23 = sshll.u32 %s344_s1, 4  ;;  %s200_s23 = int_to_ptr.vmem [resolvable:$true] %s199_s23 }
  0x12   :  { %s317_s24 = scalar_lea.vmem %s200_s23, 16  ;;  %s321_s25 = scalar_lea.vmem %s200_s23, 32 }
  0x13   :  { %v306_v58 = vpack.c.bf16 %v62_v57, %v61_v56  ;;  %p318_p0 = scmp.ne.s32.totalorder %s200_s23, %s317_s24  ;;  %p322_p1 = scmp.lt.s32.totalorder %s200_s23, %s200_s23 }
  0x14   :  { %p323_p2 = scmp.lt.s32.totalorder %s321_s25, %s317_s24 }
  0x16   :  { %p324_p3 = por %p323_p2, %p322_p1 }
  0x17   :  { %288 = vmatpush3.bf16.xpose.msk.msra.mxu0 %vm380_vm1, %v286_v23 }
  0x18   :  { %289 = vmatprep.subr.bf16.mxu0 %v341_v3  ;;  %p325_p4 = pnand %p324_p3, %p318_p0 }
  0x1f   :  { %292 = vmatpush3.bf16.xpose.msk.msra.mxu0 %vm380_vm1, %v290_v30 }
  0x20   :  { %293 = vmatprep.subr.bf16.mxu0 %v341_v3 }
  0x27   :  { %296 = vmatpush3.bf16.xpose.msk.msra.mxu0 %vm380_vm1, %v294_v37 }
  0x28   :  { %297 = vmatprep.subr.bf16.mxu0 %v341_v3 }
  0x2f   :  { %300 = vmatpush3.bf16.xpose.msk.msra.mxu0 %vm380_vm1, %v298_v44 }
  0x30   :  { %301 = vmatprep.subr.bf16.mxu0 %v341_v3 }
  0x37   :  { %304 = vmatpush3.bf16.xpose.msk.msra.mxu0 %vm380_vm1, %v302_v51 }
  0x38   :  { %305 = vmatprep.subr.bf16.mxu0 %v341_v3 }
  0x3f   :  { %308 = vmatpush3.bf16.xpose.msk.msra.mxu0 %vm380_vm1, %v306_v58 }
  0x46   :  { %275 = vmatmul.mubr.msk.f32.vlgmr.msra.gmra.mrb[0].mxu0 %vm64_vm0, %v63_v59 }
 0x119   :  { %v182_v60 = vpop.f32.mrb[0].mxu0 }
 0x11a   :  { %v224_v61 = vmul.f32 -1.442695, %v182_v60  ;;  %v276_v62 = vpop.f32.mrb[1].mxu0 }
 0x11c   :  { %313 = vpow2.f32 %v224_v61 }
 0x126   :  { %v314_v63 = vpop.eup %313 }
 0x127   :  { %v189_v0 = vadd.f32 1.0, %v314_v63 }
 0x129   :  { %315 = vrcp.f32 %v189_v0 }
 0x133   :  { %v316_v1 = vpop.eup %315 }
 0x134   :  { %192 = vst [vmem:[#allocation2] sm:$0x1] %v316_v1 }
 0x135   :  { %328 = shalt.err (!%p325_p4)
}
 0x136   :  { %s329_s27 = scalar_lea.hbm %s510_s3, 16 }
 0x137   :  { %p330_p5 = scmp.ne.s32.totalorder %s510_s3, %s329_s27  ;;  %p333_p6 = scmp.lt.u32.totalorder %s329_s27, %s510_s3 }
 0x139   :  { %p335_p7 = pnand %p333_p6, %p330_p5 }
 0x13b   :  { %338 = shalt.err (!%p335_p7)
}
 0x13c   :  { %202 = dma.vmem_to_hbm [thread:$0]  %s200_s23, 16, %s510_s3, [#allocation3]  }
 0x13d   :  { %339 = dma.done.wait [#allocation3], 16  }
 0x13e   :  { %340 = vsyncadd [#allocation3], 4294967280 }
 0x13f   :  { %206 = vsyncpa [#allocation3], 1 }

</bundles_post_ra>
